<compile_context>
chip_gen: v7x
topology: tpu7x:2x2x1
jax: 0.10.0
libtpu: 0.0.40
codegen_flags: <defaults>
</compile_context>

<pallas_src>
import jax
import jax.numpy as jnp
from jax.experimental import pallas as pl
from jax.experimental.pallas import tpu as pltpu


def _proj_kmeans_kernel(x_ref, pcat_ref, psum_ref, cbdt_ref, cbd_ref, cvs_ref, csq_ref,
                        xp_ref, xr_ref, xpm_ref, xrm_ref, lbl_ref):
    """One batch tile: fused projection + k-means hard assignment for all M subspaces."""
    x = x_ref[...]                                     # (TB, D) f32
    tb = x.shape[0]
    mk = csq_ref.shape[1]                              # M*K
    m_sub = lbl_ref.shape[1]                           # M
    k_per = mk // m_sub                                # K

    # ---- Projection: all M subspaces in one full-width MXU matmul ------------------
    # P_cat[:, m*D:(m+1)*D] = W[m] @ W[m]^T (precomputed), so xp_all[b, m*D+d] = X_p[b,m,d].
    xp_all = jnp.dot(x, pcat_ref[...], preferred_element_type=jnp.float32)      # (TB, M*D)
    # merge(X_p) = X @ sum_m W[m] W[m]^T
    xp_merge = jnp.dot(x, psum_ref[...], preferred_element_type=jnp.float32)    # (TB, D)

    # ---- Centroid scores for every (m, k) in a single block-diagonal matmul --------
    dots = jnp.dot(xp_all, cbdt_ref[...], preferred_element_type=jnp.float32)   # (TB, M*K)
    # label = argmax_k dist = argmax_k (2*dot - ||c||^2); sqrt / ||xp||^2 dropped.
    score = 2.0 * dots - csq_ref[...]                                           # (TB, M*K)

    # ---- Per-subspace hard argmax (full-width VPU/XLU ops, loop-invariants hoisted) -
    idx_full = jax.lax.broadcasted_iota(jnp.int32, (tb, mk), 1)
    col_idx = jax.lax.broadcasted_iota(jnp.int32, (tb, m_sub), 1)
    neg = jnp.float32(-3.0e38)
    onehot = None
    labels = None
    for m in range(m_sub):                             # M is small & static -> unrolled
        in_group = (idx_full >= m * k_per) & (idx_full < (m + 1) * k_per)
        s_m = jnp.where(in_group, score, neg)                                   # (TB, M*K)
        mx = jnp.max(s_m, axis=-1, keepdims=True)                               # group max
        sel = jnp.min(jnp.where(s_m == mx, idx_full, jnp.int32(mk)),
                      axis=-1, keepdims=True)          # global argmax idx, first-index ties
        oh_m = (idx_full == sel).astype(jnp.float32)                            # (TB, M*K)
        lbl_m = jnp.where(col_idx == m, sel - m * k_per, 0)                     # (TB, M)
        onehot = oh_m if onehot is None else onehot + oh_m
        labels = lbl_m if labels is None else labels + lbl_m

    # ---- Assignments: two lane-dense MXU matmuls ------------------------------------
    xr_all = jnp.dot(onehot, cbd_ref[...], preferred_element_type=jnp.float32)    # (TB, M*D)
    xr_merge = jnp.dot(onehot, cvs_ref[...], preferred_element_type=jnp.float32)  # (TB, D)

    # ---- Exactly one wide store per output ------------------------------------------
    xp_ref[...] = xp_all.astype(xp_ref.dtype)
    xr_ref[...] = xr_all.astype(xr_ref.dtype)
    xpm_ref[...] = xp_merge.astype(xpm_ref.dtype)
    xrm_ref[...] = xr_merge.astype(xrm_ref.dtype)
    lbl_ref[...] = labels


def proj_kmeans_forward(X, weight, center, T=1.0, *, tb=512,
                        vmem_budget=40 * 1024 * 1024):
    """Pallas equivalent of ProjKmeans(M, K, D, T).forward(X).

    X: (B, D); weight: (M, D, D//M) = Projection_share.weight; center: (M, K, D).
    Returns (X_r, X_p, merge(X_r), merge(X_p), centroid, label) like the module.
    """
    del T  # forward value is T-independent (argmax of a monotone transform of dist)
    B, D = X.shape
    M, Dw, Dp = weight.shape
    Mc, K, Dc = center.shape
    assert Dw == D and Dc == D and Mc == M and D % M == 0

    f32 = jnp.float32
    w = weight.astype(f32)
    c = center.astype(f32)

    # ---- wrapper-side (tiny, one-time) parameter restructuring -----------------------
    P = jnp.einsum('mdp,mep->mde', w, w)                            # (M, D, D): W[m] W[m]^T
    p_cat = jnp.transpose(P, (1, 0, 2)).reshape(D, M * D)           # concat_m along lanes
    p_sum = jnp.sum(P, axis=0)                                      # (D, D) for merge(X_p)
    eye = jnp.eye(M, dtype=f32)
    cbd_t = jnp.einsum('mn,mkd->mdnk', eye, c).reshape(M * D, M * K)   # blockdiag(C[m]^T)
    cbd = jnp.einsum('mn,mkd->mknd', eye, c).reshape(M * K, M * D)     # blockdiag(C[m])
    c_vs = c.reshape(M * K, D)                                         # vstack(C[m])
    c_sq = jnp.sum(c * c, axis=-1).reshape(1, M * K)                   # ||C[m,k]||^2

    # ---- batch tiling -----------------------------------------------------------------
    TB = min(tb, B)
    if TB == B:
        # Split small batches in two when aligned so the "parallel" axis can shard
        # across v7x's 2 TensorCores.
        if B >= 16 and B % 16 == 0:
            TB = B // 2
    else:
        TB = max(8, TB - (TB % 8))

    def _est(tbv):  # double-buffered working-set estimate (bytes)
        par = D * M * D + D * D + M * D * M * K + M * K * M * D + M * K * D + M * K
        io = tbv * D + 2 * tbv * M * D + 2 * tbv * D + tbv * M
        return 2 * 4 * (par + io)

    while _est(TB) > vmem_budget and TB > 8:            # re-derive tile for 64 MiB (v7x)
        TB = max(8, (TB // 2) // 8 * 8)

    nblk = pl.cdiv(B, TB)
    Bp = nblk * TB
    if Bp != B:
        # Ragged tail fallback: pad + slice.  The aligned common case pays nothing.
        # TODO(synk): mask the tail rows in-kernel instead of padding, to avoid the
        # extra HBM round-trip when B is not tile-aligned.
        x_in = jnp.pad(X, ((0, Bp - B), (0, 0)))
    else:
        x_in = X

    out_shape = (
        jax.ShapeDtypeStruct((Bp, M * D), X.dtype),     # X_p  (flat, lane-dense)
        jax.ShapeDtypeStruct((Bp, M * D), X.dtype),     # X_r  (flat, lane-dense)
        jax.ShapeDtypeStruct((Bp, D), X.dtype),         # merge(X_p)
        jax.ShapeDtypeStruct((Bp, D), X.dtype),         # merge(X_r)
        jax.ShapeDtypeStruct((Bp, M), jnp.int32),       # label
    )

    cp_kwargs = dict(dimension_semantics=("parallel",))
    need = _est(TB)
    if need > 24 * 1024 * 1024:
        cp_kwargs["vmem_limit_bytes"] = int(min(need + (16 << 20), 100 << 20))

    xp_flat, xr_flat, xp_merge, xr_merge, label2d = pl.pallas_call(
        _proj_kmeans_kernel,
        out_shape=out_shape,
        grid=(nblk,),
        in_specs=[
            pl.BlockSpec((TB, D), lambda i: (i, 0)),            # X batch tile
            pl.BlockSpec((D, M * D), lambda i: (0, 0)),         # P_cat   (VMEM-resident)
            pl.BlockSpec((D, D), lambda i: (0, 0)),             # P_sum   (VMEM-resident)
            pl.BlockSpec((M * D, M * K), lambda i: (0, 0)),     # blockdiag(C^T)
            pl.BlockSpec((M * K, M * D), lambda i: (0, 0)),     # blockdiag(C)
            pl.BlockSpec((M * K, D), lambda i: (0, 0)),         # vstack(C)
            pl.BlockSpec((1, M * K), lambda i: (0, 0)),         # ||C||^2
        ],
        out_specs=[
            pl.BlockSpec((TB, M * D), lambda i: (i, 0)),
            pl.BlockSpec((TB, M * D), lambda i: (i, 0)),
            pl.BlockSpec((TB, D), lambda i: (i, 0)),
            pl.BlockSpec((TB, D), lambda i: (i, 0)),
            pl.BlockSpec((TB, M), lambda i: (i, 0)),
        ],
        compiler_params=pltpu.CompilerParams(**cp_kwargs),
    )(x_in, p_cat, p_sum, cbd_t, cbd, c_vs, c_sq)

    if Bp != B:
        xp_flat, xr_flat = xp_flat[:B], xr_flat[:B]
        xp_merge, xr_merge = xp_merge[:B], xr_merge[:B]
        label2d = label2d[:B]

    # Row-major reshapes: metadata-only views of the lane-dense kernel outputs.
    X_p = xp_flat.reshape(B, M, D)
    X_r = xr_flat.reshape(B, M, D)
    label = label2d[:, :, None]                          # (B, M, 1), int32
    return X_r, X_p, xr_merge, xp_merge, center, label


def _ref_forward(X, weight, center):
    """Pure-JAX reference of the PyTorch forward (for correctness checking)."""
    hp = jax.lax.Precision.HIGHEST
    M, D, Dp = weight.shape
    K = center.shape[1]
    a = jnp.einsum('mdp,bd->mpb', weight, X, precision=hp)       # tensordot dims [[1],[1]]
    b = jnp.einsum('mdp,mpb->mdb', weight, a, precision=hp)      # bmm
    X_p = jnp.transpose(b, (2, 0, 1))                            # (B, M, D)
    x1 = jnp.transpose(X_p, (1, 2, 0))                           # (M, D, B)
    x_sq = jnp.sum(x1 * x1, axis=1)                              # (M, B)
    dot = jnp.einsum('mkd,mdb->mkb', center, x1, precision=hp)   # (M, K, B)
    c_sq = jnp.sum(center * center, axis=-1)                     # (M, K)
    dist = c_sq[:, :, None] - 2.0 * dot + x_sq[:, None, :]       # (M, K, B)
    dist = -jnp.sqrt(jnp.transpose(dist, (2, 0, 1)))             # (B, M, K)
    label = jnp.argmax(dist, axis=-1)                            # (B, M)
    onehot = jax.nn.one_hot(label, K, dtype=X.dtype)             # (B, M, K)
    X_r = jnp.einsum('bmk,mkd->bmd', onehot, center, precision=hp)
    return X_r, X_p, X_r.sum(1), X_p.sum(1), center, label[..., None]


if __name__ == "__main__":
    key = jax.random.PRNGKey(0)
    kx, kw, kc = jax.random.split(key, 3)

    # Small shapes consistent with ProjKmeans(M, K, D, T): D divisible by M.
    B, D, M, K, T = 16, 32, 4, 16, 0.1
    Dp = D // M

    X = jax.random.normal(kx, (B, D), dtype=jnp.float32)
    weight = 0.01 * jax.random.normal(kw, (M, D, Dp), dtype=jnp.float32)
    center = 0.01 * jax.random.normal(kc, (M, K, D), dtype=jnp.float32)

    outs = jax.block_until_ready(proj_kmeans_forward(X, weight, center, T))
    X_r, X_p, Xr_m, Xp_m, cen, lbl = outs

    # Shape checks (match the PyTorch module's return).
    assert X_r.shape == (B, M, D) and X_p.shape == (B, M, D)
    assert Xr_m.shape == (B, D) and Xp_m.shape == (B, D)
    assert cen.shape == (M, K, D) and lbl.shape == (B, M, 1)

    rX_r, rX_p, rXr_m, rXp_m, rcen, rlbl = _ref_forward(X, weight, center)

    # Label-independent numerical checks.
    assert bool(jnp.allclose(X_p, rX_p, atol=1e-4, rtol=2e-2))
    assert bool(jnp.allclose(Xp_m, rXp_m, atol=1e-4, rtol=2e-2))
    assert bool(jnp.array_equal(cen, rcen))

    # Self-consistency: X_r must be the centroids selected by the kernel's own labels.
    lbl_k = lbl[..., 0]
    gathered = cen[jnp.arange(M)[None, :], lbl_k]                # (B, M, D)
    assert bool(jnp.allclose(X_r, gathered, atol=1e-4, rtol=2e-2))
    assert bool(jnp.allclose(Xr_m, X_r.sum(1), atol=1e-4, rtol=2e-2))

    # Label check vs. reference; tolerate flips only on genuine numerical near-ties.
    rlbl_k = rlbl[..., 0].astype(jnp.int32)
    if bool(jnp.array_equal(lbl_k, rlbl_k)):
        assert bool(jnp.allclose(X_r, rX_r, atol=1e-4, rtol=2e-2))
        assert bool(jnp.allclose(Xr_m, rXr_m, atol=1e-4, rtol=2e-2))
    else:
        hp = jax.lax.Precision.HIGHEST
        rdot = jnp.einsum('bmd,mkd->bmk', rX_p, center, precision=hp)
        rcsq = jnp.sum(center * center, axis=-1)
        rscore = 2.0 * rdot - rcsq[None]                         # (B, M, K)
        sk = jnp.take_along_axis(rscore, lbl_k[..., None], axis=-1)[..., 0]
        sr = jnp.take_along_axis(rscore, rlbl_k[..., None], axis=-1)[..., 0]
        assert bool(jnp.all(jnp.abs(sk - sr) <= 5e-5 + 1e-2 * jnp.abs(sr)))

    # TODO(synk): backward / straight-through gradient of softargmax (needs softmax(dist/T))
    # is not implemented; this kernel covers the forward pass only.
    print("KERNEL_OK")
</pallas_src>

<mosaic_0001>
module attributes {stable_mosaic.version = 11 : i64} {
  func.func @_proj_kmeans_kernel(%arg0: i32, %arg1: memref<8x32xf32, #tpu.memory_space<vmem>>, %arg2: memref<32x128xf32, #tpu.memory_space<vmem>>, %arg3: memref<32x32xf32, #tpu.memory_space<vmem>>, %arg4: memref<128x64xf32, #tpu.memory_space<vmem>>, %arg5: memref<64x128xf32, #tpu.memory_space<vmem>>, %arg6: memref<64x32xf32, #tpu.memory_space<vmem>>, %arg7: memref<1x64xf32, #tpu.memory_space<vmem>>, %arg8: memref<8x128xf32, #tpu.memory_space<vmem>>, %arg9: memref<8x128xf32, #tpu.memory_space<vmem>>, %arg10: memref<8x32xf32, #tpu.memory_space<vmem>>, %arg11: memref<8x32xf32, #tpu.memory_space<vmem>>, %arg12: memref<8x4xi32, #tpu.memory_space<vmem>>) attributes {dimension_semantics = [#tpu.dimension_semantics<parallel>], iteration_bounds = array<i64: 2>, scalar_prefetch = 0 : i64, scratch_operands = 0 : i64, tpu.core_type = #tpu.core_type<tc>, window_params = [{transform_indices = @transform_0, window_bounds = array<i64: 8, 32>}, {pipeline_mode = #tpu.pipeline_mode<synchronous>, transform_indices = @transform_1, window_bounds = array<i64: 32, 128>}, {pipeline_mode = #tpu.pipeline_mode<synchronous>, transform_indices = @transform_2, window_bounds = array<i64: 32, 32>}, {pipeline_mode = #tpu.pipeline_mode<synchronous>, transform_indices = @transform_3, window_bounds = array<i64: 128, 64>}, {pipeline_mode = #tpu.pipeline_mode<synchronous>, transform_indices = @transform_4, window_bounds = array<i64: 64, 128>}, {pipeline_mode = #tpu.pipeline_mode<synchronous>, transform_indices = @transform_5, window_bounds = array<i64: 64, 32>}, {pipeline_mode = #tpu.pipeline_mode<synchronous>, transform_indices = @transform_6, window_bounds = array<i64: 1, 64>}, {transform_indices = @transform_7, window_bounds = array<i64: 8, 128>}, {transform_indices = @transform_8, window_bounds = array<i64: 8, 128>}, {transform_indices = @transform_9, window_bounds = array<i64: 8, 32>}, {transform_indices = @transform_10, window_bounds = array<i64: 8, 32>}, {transform_indices = @transform_11, window_bounds = array<i64: 8, 4>}]} {
    %c0 = arith.constant 0 : index
    %c0_0 = arith.constant 0 : index
    %0 = vector.load %arg1[%c0, %c0_0] : memref<8x32xf32, #tpu.memory_space<vmem>>, vector<8x32xf32>
    %c0_1 = arith.constant 0 : index
    %c0_2 = arith.constant 0 : index
    %1 = vector.load %arg2[%c0_1, %c0_2] : memref<32x128xf32, #tpu.memory_space<vmem>>, vector<32x128xf32>
    %cst = arith.constant dense<0.000000e+00> : vector<8x128xf32>
    %2 = tpu.matmul %0, %1, %cst {dimension_numbers = #tpu.dot_dimension_numbers<[1], [0], [0], [1], [0, 0, 1, 1], [], []>} : vector<8x32xf32>, vector<32x128xf32>, vector<8x128xf32> -> vector<8x128xf32>
    %c0_3 = arith.constant 0 : index
    %c0_4 = arith.constant 0 : index
    %3 = vector.load %arg3[%c0_3, %c0_4] : memref<32x32xf32, #tpu.memory_space<vmem>>, vector<32x32xf32>
    %cst_5 = arith.constant dense<0.000000e+00> : vector<8x32xf32>
    %4 = tpu.matmul %0, %3, %cst_5 {dimension_numbers = #tpu.dot_dimension_numbers<[1], [0], [0], [1], [0, 0, 1, 1], [], []>} : vector<8x32xf32>, vector<32x32xf32>, vector<8x32xf32> -> vector<8x32xf32>
    %c0_6 = arith.constant 0 : index
    %c0_7 = arith.constant 0 : index
    %5 = vector.load %arg4[%c0_6, %c0_7] : memref<128x64xf32, #tpu.memory_space<vmem>>, vector<128x64xf32>
    %cst_8 = arith.constant dense<0.000000e+00> : vector<8x64xf32>
    %6 = tpu.matmul %2, %5, %cst_8 {dimension_numbers = #tpu.dot_dimension_numbers<[1], [0], [0], [1], [0, 0, 1, 1], [], []>} : vector<8x128xf32>, vector<128x64xf32>, vector<8x64xf32> -> vector<8x64xf32>
    %cst_9 = arith.constant 2.000000e+00 : f32
    %7 = vector.broadcast %cst_9 : f32 to vector<8x64xf32>
    %8 = arith.mulf %7, %6 : vector<8x64xf32>
    %c0_10 = arith.constant 0 : index
    %c0_11 = arith.constant 0 : index
    %9 = vector.load %arg7[%c0_10, %c0_11] : memref<1x64xf32, #tpu.memory_space<vmem>>, vector<1x64xf32>
    %10 = vector.broadcast %9 : vector<1x64xf32> to vector<8x64xf32>
    %11 = arith.subf %8, %10 : vector<8x64xf32>
    %12 = tpu.iota {dimensions = array<i32: 1>} : vector<8x64xi32>
    %13 = tpu.iota {dimensions = array<i32: 1>} : vector<8x4xi32>
    %c0_i32 = arith.constant 0 : i32
    %14 = vector.broadcast %c0_i32 : i32 to vector<8x64xi32>
    %15 = arith.cmpi sge, %12, %14 : vector<8x64xi32>
    %c16_i32 = arith.constant 16 : i32
    %16 = vector.broadcast %c16_i32 : i32 to vector<8x64xi32>
    %17 = arith.cmpi slt, %12, %16 : vector<8x64xi32>
    %18 = arith.andi %15, %17 : vector<8x64xi1>
    %cst_12 = arith.constant -3.000000e+38 : f32
    %19 = vector.broadcast %cst_12 : f32 to vector<8x64xf32>
    %20 = arith.select %18, %11, %19 : vector<8x64xi1>, vector<8x64xf32>
    %cst_13 = arith.constant dense<0xFF800000> : vector<8xf32>
    %21 = vector.multi_reduction <maximumf>, %20, %cst_13 [1] : vector<8x64xf32> to vector<8xf32>
    %22 = vector.shape_cast %21 : vector<8xf32> to vector<8x1xf32>
    %23 = vector.broadcast %22 : vector<8x1xf32> to vector<8x64xf32>
    %24 = arith.cmpf oeq, %20, %23 : vector<8x64xf32>
    %c64_i32 = arith.constant 64 : i32
    %25 = vector.broadcast %c64_i32 : i32 to vector<8x64xi32>
    %26 = arith.select %24, %12, %25 : vector<8x64xi1>, vector<8x64xi32>
    %cst_14 = arith.constant dense<2147483647> : vector<8xi32>
    %27 = vector.multi_reduction <minsi>, %26, %cst_14 [1] : vector<8x64xi32> to vector<8xi32>
    %28 = vector.shape_cast %27 : vector<8xi32> to vector<8x1xi32>
    %29 = vector.broadcast %28 : vector<8x1xi32> to vector<8x64xi32>
    %30 = arith.cmpi eq, %12, %29 : vector<8x64xi32>
    %31 = arith.extui %30 : vector<8x64xi1> to vector<8x64xi32>
    %32 = arith.sitofp %31 : vector<8x64xi32> to vector<8x64xf32>
    %c0_i32_15 = arith.constant 0 : i32
    %33 = vector.broadcast %c0_i32_15 : i32 to vector<8x4xi32>
    %34 = arith.cmpi eq, %13, %33 : vector<8x4xi32>
    %c0_i32_16 = arith.constant 0 : i32
    %35 = vector.broadcast %c0_i32_16 : i32 to vector<8x1xi32>
    %36 = arith.subi %28, %35 : vector<8x1xi32>
    %c0_i32_17 = arith.constant 0 : i32
    %37 = vector.shape_cast %36 : vector<8x1xi32> to vector<8x1xi32>
    %38 = vector.broadcast %37 : vector<8x1xi32> to vector<8x4xi32>
    %39 = vector.broadcast %c0_i32_17 : i32 to vector<8x4xi32>
    %40 = arith.select %34, %38, %39 : vector<8x4xi1>, vector<8x4xi32>
    %c16_i32_18 = arith.constant 16 : i32
    %41 = vector.broadcast %c16_i32_18 : i32 to vector<8x64xi32>
    %42 = arith.cmpi sge, %12, %41 : vector<8x64xi32>
    %c32_i32 = arith.constant 32 : i32
    %43 = vector.broadcast %c32_i32 : i32 to vector<8x64xi32>
    %44 = arith.cmpi slt, %12, %43 : vector<8x64xi32>
    %45 = arith.andi %42, %44 : vector<8x64xi1>
    %cst_19 = arith.constant -3.000000e+38 : f32
    %46 = vector.broadcast %cst_19 : f32 to vector<8x64xf32>
    %47 = arith.select %45, %11, %46 : vector<8x64xi1>, vector<8x64xf32>
    %cst_20 = arith.constant dense<0xFF800000> : vector<8xf32>
    %48 = vector.multi_reduction <maximumf>, %47, %cst_20 [1] : vector<8x64xf32> to vector<8xf32>
    %49 = vector.shape_cast %48 : vector<8xf32> to vector<8x1xf32>
    %50 = vector.broadcast %49 : vector<8x1xf32> to vector<8x64xf32>
    %51 = arith.cmpf oeq, %47, %50 : vector<8x64xf32>
    %c64_i32_21 = arith.constant 64 : i32
    %52 = vector.broadcast %c64_i32_21 : i32 to vector<8x64xi32>
    %53 = arith.select %51, %12, %52 : vector<8x64xi1>, vector<8x64xi32>
    %cst_22 = arith.constant dense<2147483647> : vector<8xi32>
    %54 = vector.multi_reduction <minsi>, %53, %cst_22 [1] : vector<8x64xi32> to vector<8xi32>
    %55 = vector.shape_cast %54 : vector<8xi32> to vector<8x1xi32>
    %56 = vector.broadcast %55 : vector<8x1xi32> to vector<8x64xi32>
    %57 = arith.cmpi eq, %12, %56 : vector<8x64xi32>
    %58 = arith.extui %57 : vector<8x64xi1> to vector<8x64xi32>
    %59 = arith.sitofp %58 : vector<8x64xi32> to vector<8x64xf32>
    %c1_i32 = arith.constant 1 : i32
    %60 = vector.broadcast %c1_i32 : i32 to vector<8x4xi32>
    %61 = arith.cmpi eq, %13, %60 : vector<8x4xi32>
    %c16_i32_23 = arith.constant 16 : i32
    %62 = vector.broadcast %c16_i32_23 : i32 to vector<8x1xi32>
    %63 = arith.subi %55, %62 : vector<8x1xi32>
    %c0_i32_24 = arith.constant 0 : i32
    %64 = vector.shape_cast %63 : vector<8x1xi32> to vector<8x1xi32>
    %65 = vector.broadcast %64 : vector<8x1xi32> to vector<8x4xi32>
    %66 = vector.broadcast %c0_i32_24 : i32 to vector<8x4xi32>
    %67 = arith.select %61, %65, %66 : vector<8x4xi1>, vector<8x4xi32>
    %68 = arith.addf %32, %59 : vector<8x64xf32>
    %69 = arith.addi %40, %67 : vector<8x4xi32>
    %c32_i32_25 = arith.constant 32 : i32
    %70 = vector.broadcast %c32_i32_25 : i32 to vector<8x64xi32>
    %71 = arith.cmpi sge, %12, %70 : vector<8x64xi32>
    %c48_i32 = arith.constant 48 : i32
    %72 = vector.broadcast %c48_i32 : i32 to vector<8x64xi32>
    %73 = arith.cmpi slt, %12, %72 : vector<8x64xi32>
    %74 = arith.andi %71, %73 : vector<8x64xi1>
    %cst_26 = arith.constant -3.000000e+38 : f32
    %75 = vector.broadcast %cst_26 : f32 to vector<8x64xf32>
    %76 = arith.select %74, %11, %75 : vector<8x64xi1>, vector<8x64xf32>
    %cst_27 = arith.constant dense<0xFF800000> : vector<8xf32>
    %77 = vector.multi_reduction <maximumf>, %76, %cst_27 [1] : vector<8x64xf32> to vector<8xf32>
    %78 = vector.shape_cast %77 : vector<8xf32> to vector<8x1xf32>
    %79 = vector.broadcast %78 : vector<8x1xf32> to vector<8x64xf32>
    %80 = arith.cmpf oeq, %76, %79 : vector<8x64xf32>
    %c64_i32_28 = arith.constant 64 : i32
    %81 = vector.broadcast %c64_i32_28 : i32 to vector<8x64xi32>
    %82 = arith.select %80, %12, %81 : vector<8x64xi1>, vector<8x64xi32>
    %cst_29 = arith.constant dense<2147483647> : vector<8xi32>
    %83 = vector.multi_reduction <minsi>, %82, %cst_29 [1] : vector<8x64xi32> to vector<8xi32>
    %84 = vector.shape_cast %83 : vector<8xi32> to vector<8x1xi32>
    %85 = vector.broadcast %84 : vector<8x1xi32> to vector<8x64xi32>
    %86 = arith.cmpi eq, %12, %85 : vector<8x64xi32>
    %87 = arith.extui %86 : vector<8x64xi1> to vector<8x64xi32>
    %88 = arith.sitofp %87 : vector<8x64xi32> to vector<8x64xf32>
    %c2_i32 = arith.constant 2 : i32
    %89 = vector.broadcast %c2_i32 : i32 to vector<8x4xi32>
    %90 = arith.cmpi eq, %13, %89 : vector<8x4xi32>
    %c32_i32_30 = arith.constant 32 : i32
    %91 = vector.broadcast %c32_i32_30 : i32 to vector<8x1xi32>
    %92 = arith.subi %84, %91 : vector<8x1xi32>
    %c0_i32_31 = arith.constant 0 : i32
    %93 = vector.shape_cast %92 : vector<8x1xi32> to vector<8x1xi32>
    %94 = vector.broadcast %93 : vector<8x1xi32> to vector<8x4xi32>
    %95 = vector.broadcast %c0_i32_31 : i32 to vector<8x4xi32>
    %96 = arith.select %90, %94, %95 : vector<8x4xi1>, vector<8x4xi32>
    %97 = arith.addf %68, %88 : vector<8x64xf32>
    %98 = arith.addi %69, %96 : vector<8x4xi32>
    %c48_i32_32 = arith.constant 48 : i32
    %99 = vector.broadcast %c48_i32_32 : i32 to vector<8x64xi32>
    %100 = arith.cmpi sge, %12, %99 : vector<8x64xi32>
    %c64_i32_33 = arith.constant 64 : i32
    %101 = vector.broadcast %c64_i32_33 : i32 to vector<8x64xi32>
    %102 = arith.cmpi slt, %12, %101 : vector<8x64xi32>
    %103 = arith.andi %100, %102 : vector<8x64xi1>
    %cst_34 = arith.constant -3.000000e+38 : f32
    %104 = vector.broadcast %cst_34 : f32 to vector<8x64xf32>
    %105 = arith.select %103, %11, %104 : vector<8x64xi1>, vector<8x64xf32>
    %cst_35 = arith.constant dense<0xFF800000> : vector<8xf32>
    %106 = vector.multi_reduction <maximumf>, %105, %cst_35 [1] : vector<8x64xf32> to vector<8xf32>
    %107 = vector.shape_cast %106 : vector<8xf32> to vector<8x1xf32>
    %108 = vector.broadcast %107 : vector<8x1xf32> to vector<8x64xf32>
    %109 = arith.cmpf oeq, %105, %108 : vector<8x64xf32>
    %c64_i32_36 = arith.constant 64 : i32
    %110 = vector.broadcast %c64_i32_36 : i32 to vector<8x64xi32>
    %111 = arith.select %109, %12, %110 : vector<8x64xi1>, vector<8x64xi32>
    %cst_37 = arith.constant dense<2147483647> : vector<8xi32>
    %112 = vector.multi_reduction <minsi>, %111, %cst_37 [1] : vector<8x64xi32> to vector<8xi32>
    %113 = vector.shape_cast %112 : vector<8xi32> to vector<8x1xi32>
    %114 = vector.broadcast %113 : vector<8x1xi32> to vector<8x64xi32>
    %115 = arith.cmpi eq, %12, %114 : vector<8x64xi32>
    %116 = arith.extui %115 : vector<8x64xi1> to vector<8x64xi32>
    %117 = arith.sitofp %116 : vector<8x64xi32> to vector<8x64xf32>
    %c3_i32 = arith.constant 3 : i32
    %118 = vector.broadcast %c3_i32 : i32 to vector<8x4xi32>
    %119 = arith.cmpi eq, %13, %118 : vector<8x4xi32>
    %c48_i32_38 = arith.constant 48 : i32
    %120 = vector.broadcast %c48_i32_38 : i32 to vector<8x1xi32>
    %121 = arith.subi %113, %120 : vector<8x1xi32>
    %c0_i32_39 = arith.constant 0 : i32
    %122 = vector.shape_cast %121 : vector<8x1xi32> to vector<8x1xi32>
    %123 = vector.broadcast %122 : vector<8x1xi32> to vector<8x4xi32>
    %124 = vector.broadcast %c0_i32_39 : i32 to vector<8x4xi32>
    %125 = arith.select %119, %123, %124 : vector<8x4xi1>, vector<8x4xi32>
    %126 = arith.addf %97, %117 : vector<8x64xf32>
    %127 = arith.addi %98, %125 : vector<8x4xi32>
    %c0_40 = arith.constant 0 : index
    %c0_41 = arith.constant 0 : index
    %128 = vector.load %arg5[%c0_40, %c0_41] : memref<64x128xf32, #tpu.memory_space<vmem>>, vector<64x128xf32>
    %cst_42 = arith.constant dense<0.000000e+00> : vector<8x128xf32>
    %129 = tpu.matmul %126, %128, %cst_42 {dimension_numbers = #tpu.dot_dimension_numbers<[1], [0], [0], [1], [0, 0, 1, 1], [], []>} : vector<8x64xf32>, vector<64x128xf32>, vector<8x128xf32> -> vector<8x128xf32>
    %c0_43 = arith.constant 0 : index
    %c0_44 = arith.constant 0 : index
    %130 = vector.load %arg6[%c0_43, %c0_44] : memref<64x32xf32, #tpu.memory_space<vmem>>, vector<64x32xf32>
    %cst_45 = arith.constant dense<0.000000e+00> : vector<8x32xf32>
    %131 = tpu.matmul %126, %130, %cst_45 {dimension_numbers = #tpu.dot_dimension_numbers<[1], [0], [0], [1], [0, 0, 1, 1], [], []>} : vector<8x64xf32>, vector<64x32xf32>, vector<8x32xf32> -> vector<8x32xf32>
    %c0_46 = arith.constant 0 : index
    %c0_47 = arith.constant 0 : index
    %132 = vector.load %arg8[%c0_46, %c0_47] : memref<8x128xf32, #tpu.memory_space<vmem>>, vector<8x128xf32>
    tpu.vector_store %arg8[%c0_46, %c0_47], %2 {strides = array<i32>} : memref<8x128xf32, #tpu.memory_space<vmem>>, vector<8x128xf32>,
    %c0_48 = arith.constant 0 : index
    %c0_49 = arith.constant 0 : index
    %133 = vector.load %arg9[%c0_48, %c0_49] : memref<8x128xf32, #tpu.memory_space<vmem>>, vector<8x128xf32>
    tpu.vector_store %arg9[%c0_48, %c0_49], %129 {strides = array<i32>} : memref<8x128xf32, #tpu.memory_space<vmem>>, vector<8x128xf32>,
    %c0_50 = arith.constant 0 : index
    %c0_51 = arith.constant 0 : index
    %134 = vector.load %arg10[%c0_50, %c0_51] : memref<8x32xf32, #tpu.memory_space<vmem>>, vector<8x32xf32>
    tpu.vector_store %arg10[%c0_50, %c0_51], %4 {strides = array<i32>} : memref<8x32xf32, #tpu.memory_space<vmem>>, vector<8x32xf32>,
    %c0_52 = arith.constant 0 : index
    %c0_53 = arith.constant 0 : index
    %135 = vector.load %arg11[%c0_52, %c0_53] : memref<8x32xf32, #tpu.memory_space<vmem>>, vector<8x32xf32>
    tpu.vector_store %arg11[%c0_52, %c0_53], %131 {strides = array<i32>} : memref<8x32xf32, #tpu.memory_space<vmem>>, vector<8x32xf32>,
    %c0_54 = arith.constant 0 : index
    %c0_55 = arith.constant 0 : index
    %136 = vector.load %arg12[%c0_54, %c0_55] : memref<8x4xi32, #tpu.memory_space<vmem>>, vector<8x4xi32>
    tpu.vector_store %arg12[%c0_54, %c0_55], %127 {strides = array<i32>} : memref<8x4xi32, #tpu.memory_space<vmem>>, vector<8x4xi32>,
    return
  }
  func.func @transform_0(%arg0: i32) -> (i32, i32) {
    %c0_i32 = arith.constant 0 : i32
    %c0_i32_0 = arith.constant 0 : i32
    return %arg0, %c0_i32 : i32, i32
  }
  func.func @transform_1(%arg0: i32) -> (i32, i32) {
    %c0_i32 = arith.constant 0 : i32
    %c0_i32_0 = arith.constant 0 : i32
    %c0_i32_1 = arith.constant 0 : i32
    return %c0_i32, %c0_i32_0 : i32, i32
  }
  func.func @transform_2(%arg0: i32) -> (i32, i32) {
    %c0_i32 = arith.constant 0 : i32
    %c0_i32_0 = arith.constant 0 : i32
    %c0_i32_1 = arith.constant 0 : i32
    return %c0_i32, %c0_i32_0 : i32, i32
  }
  func.func @transform_3(%arg0: i32) -> (i32, i32) {
    %c0_i32 = arith.constant 0 : i32
    %c0_i32_0 = arith.constant 0 : i32
    %c0_i32_1 = arith.constant 0 : i32
    return %c0_i32, %c0_i32_0 : i32, i32
  }
  func.func @transform_4(%arg0: i32) -> (i32, i32) {
    %c0_i32 = arith.constant 0 : i32
    %c0_i32_0 = arith.constant 0 : i32
    %c0_i32_1 = arith.constant 0 : i32
    return %c0_i32, %c0_i32_0 : i32, i32
  }
  func.func @transform_5(%arg0: i32) -> (i32, i32) {
    %c0_i32 = arith.constant 0 : i32
    %c0_i32_0 = arith.constant 0 : i32
    %c0_i32_1 = arith.constant 0 : i32
    return %c0_i32, %c0_i32_0 : i32, i32
  }
  func.func @transform_6(%arg0: i32) -> (i32, i32) {
    %c0_i32 = arith.constant 0 : i32
    %c0_i32_0 = arith.constant 0 : i32
    %c0_i32_1 = arith.constant 0 : i32
    return %c0_i32, %c0_i32_0 : i32, i32
  }
  func.func @transform_7(%arg0: i32) -> (i32, i32) {
    %c0_i32 = arith.constant 0 : i32
    %c0_i32_0 = arith.constant 0 : i32
    return %arg0, %c0_i32 : i32, i32
  }
  func.func @transform_8(%arg0: i32) -> (i32, i32) {
    %c0_i32 = arith.constant 0 : i32
    %c0_i32_0 = arith.constant 0 : i32
    return %arg0, %c0_i32 : i32, i32
  }
  func.func @transform_9(%arg0: i32) -> (i32, i32) {
    %c0_i32 = arith.constant 0 : i32
    %c0_i32_0 = arith.constant 0 : i32
    return %arg0, %c0_i32 : i32, i32
  }
  func.func @transform_10(%arg0: i32) -> (i32, i32) {
    %c0_i32 = arith.constant 0 : i32
    %c0_i32_0 = arith.constant 0 : i32
    return %arg0, %c0_i32 : i32, i32
  }
  func.func @transform_11(%arg0: i32) -> (i32, i32) {
    %c0_i32 = arith.constant 0 : i32
    %c0_i32_0 = arith.constant 0 : i32
    return %arg0, %c0_i32 : i32, i32
  }
}

</mosaic_0001>

<bundles_post_ra>
// kernel: tpu_custom_call.1
= control target key start
LH: loop header
LB: loop body
LE: loop exit
PB: predicated region body
PF: predicated region fallthrough
CT: control target
= control target key end

     0   :  { %s2142_s0 = inlined_call_operand.vmem [shape: f32[16,32], index: 0, kind: input, shape index: {}]   ;;  %s2143_s1 = inlined_call_operand.vmem [shape: f32[32,128], index: 1, kind: input, shape index: {}]   ;;  %s2144_s2 = inlined_call_operand.vmem [shape: f32[32,32], index: 2, kind: input, shape index: {}]   ;;  %s2145_s3 = inlined_call_operand.vmem [shape: f32[128,64], index: 3, kind: input, shape index: {}]   ;;  %s2146_s4 = inlined_call_operand.vmem [shape: f32[64,128], index: 4, kind: input, shape index: {}]   ;;  %s2147_s5 = inlined_call_operand.vmem [shape: f32[64,32], index: 5, kind: input, shape index: {}]   ;;  %s2148_s6 = inlined_call_operand.vmem [shape: f32[1,64], index: 6, kind: input, shape index: {}]   ;;  %s2149_s7 = inlined_call_operand.hbm [shape: f32[16,128], index: 7, kind: output, shape index: {0}]   ;;  %s2150_s8 = inlined_call_operand.hbm [shape: f32[16,128], index: 8, kind: output, shape index: {1}]   ;;  %s2151_s9 = inlined_call_operand.hbm [shape: f32[16,32], index: 9, kind: output, shape index: {2}]   ;;  %s2152_s10 = inlined_call_operand.hbm [shape: f32[16,32], index: 10, kind: output, shape index: {3}]   ;;  %s2153_s11 = inlined_call_operand.vmem [shape: s32[16,4], index: 11, kind: output, shape index: {4}]  }
   0x1   :  { %2158 = sst [smem:[#allocation12_spill]] %s2142_s0 }
   0x2   :  { %2159 = sst [smem:[#allocation13_spill]] %s2143_s1 }
   0x3   :  { %2160 = sst [smem:[#allocation14_spill]] %s2144_s2 }
   0x4   :  { %2161 = sst [smem:[#allocation15_spill]] %s2145_s3 }
   0x5   :  { %2162 = sst [smem:[#allocation16_spill]] %s2146_s4 }
   0x6   :  { %17 = vsyncpa [#allocation3], 0 }
   0x7   :  { %19 = vsyncpa [#allocation3 + $0x1], 0 }
   0x8   :  { %20 = vsyncpa [#allocation5], 0 }
   0x9   :  { %22 = vsyncpa [#allocation5 + $0x1], 0 }
   0xa   :  { %23 = vsyncpa [#allocation8], 0 }
   0xb   :  { %25 = vsyncpa [#allocation8 + $0x1], 0  ;;  %s1724_s17 = smov 0   ;;  %s1726_s18 = smov 0  }
   0xc   :  { %s1728_s19 = smov 0   ;;  %s1730_s20 = smov 0  }
   0xd LB: > { %s1745_s21 = sadd.s32 4294967295, %s1655_s20   ;;  %s2154_s22 = sadd.s32 4294967294, %s1655_s20   ;;  %s1655_s20 = sphi %s1730_s20, %s2177_s20   ;;  %s1651_s19 = sphi %s1728_s19, %s2176_s19   ;;  %s1647_s18 = sphi %s1726_s18, %s2175_s18   ;;  %s1643_s17 = sphi %s1724_s17, %s2174_s17  }
   0xe   : > { %s1749_s23 = sadd.s32 1, %s1655_s20   ;;  %s190_s24 = sadd.s32 1, %s1651_s19 }
   0xf   : > { %s187_s25 = ssub.s32 %s1655_s20, %s1749_s23  ;;  %p200_p0 = scmp.ne.s32.totalorder %s1651_s19, %s1647_s18 }
  0x10   : > { %p188_p1 = scmp.eq.s32.totalorder %s187_s25, 0  ;;  %p201_p2 = scmp.eq.s32.totalorder %s1745_s21, 1 }
  0x11   : > { %p206_p3 = scmp.ne.s32.totalorder %s1647_s18, %s1643_s17  ;;  %p207_p4 = scmp.eq.s32.totalorder %s2154_s22, 1 }
  0x12   : > { %s1762_s26 = scalar_select %p188_p1, %s1651_s19, %s190_s24  }
  0x13   : > { %p1764_p5 = por %p201_p2, %p200_p0  ;;  %p1768_p6 = por %p207_p4, %p206_p3 }
  0x14   : > { %p1215_p7 = scmp.ge.s32.totalorder %s1655_s20, 1  ;;  %p354_p8 = scmp.lt.s32.totalorder %s1655_s20, 3 }
  0x16   : > { %p355_p9 = pnand %p1215_p7, %p354_p8 }
  0x17   : > { %s2165_s1 = sld [smem:[#allocation13_spill]] (!%p355_p9)  ;;  %v1657_v3 = vmov (!%p355_p9), 0.0|0.0   ;;  %vm1658_vm0 = vmmov (!%p355_p9), 0   ;;  %v1659_v6 = vmov (!%p355_p9), 0.0   ;;  %p412_p10 = scmp.lt.s32.totalorder (!%p355_p9), %s1745_s21, 1  ;;  %vm425_vm1 = vcmask (!%p355_p9), 261120  }
  0x18   : > { %358 = sbr.rel (%p355_p9) target bundleno = 1193 (0x4a9), region = 48  ;;  %1384 = vmatprep.subr.bf16.mxu0 (!%p355_p9), %v1657_v3  ;;  %1297 = vmatprep.mubr.msk.f32.mxu0 (!%p355_p9), %vm1658_vm0, %v1659_v6  ;;  %s2166_s3 = sld [smem:[#allocation15_spill]] (!%p355_p9)  ;;  %v668_v35 = vlaneseq (!%p355_p9)  ;;  %v1224_v38 = vld [vmem:[%s2148_s6] ss:$0 sm:$0xff] (!%p355_p9)  ;;  %vm674_vm10 = vcmask (!%p355_p9), 523264  }
  0x19   : > { %1390 = vmatprep.subr.bf16.mxu1 (!%p355_p9), %v1657_v3  ;;  %1308 = vmatprep.mubr.msk.f32.mxu1 (!%p355_p9), %vm1658_vm0, %v1659_v6  ;;  %s2167_s0 = sld [smem:[#allocation12_spill]] (!%p355_p9)  ;;  %s1866_s13 = sand.u32 (!%p355_p9), 1, %s1647_s18  }
  0x1a   : > { %s1869_s15 = sshll.u32 (!%p355_p9), %s1866_s13, 3  ;;  %v1874_v36 = vand.u32 (!%p355_p9), 127, %v668_v35  ;;  %s2168_s2 = sld [smem:[#allocation14_spill]] (!%p355_p9) }
  0x1b   : > { %s2155_s22 = scalar_lea.vmem (!%p355_p9), [#allocation2], %s1869_s15  ;;  %s2169_s4 = sld [smem:[#allocation16_spill]] (!%p355_p9) }
  0x1c   : > { %vm732_vm2 = vcmp.ge.s32.totalorder (!%p355_p9), %v1874_v36, 32  ;;  %vm733_vm3 = vcmp.lt.s32.totalorder (!%p355_p9), %v1874_v36, 48  ;;  %vm764_vm4 = vcmp.ge.s32.totalorder (!%p355_p9), %v1874_v36, 48  ;;  %vm765_vm5 = vcmp.lt.s32.totalorder (!%p355_p9), %v1874_v36, 64  ;;  %s1997_s30 = sshll.u32 (!%p355_p9), %s1745_s21, 7  ;;  %s1660_s29 = smov (!%p355_p9), [#allocation2]  }
  0x1d   : > { %v421_v0 = vld [vmem:[%s2165_s1] sm:$0xff] (!%p355_p9)  ;;  %v422_v1 = vld [vmem:[%s2165_s1 + $0x8] sm:$0xff] (!%p355_p9)  ;;  %v423_v2 = vld [vmem:[%s2165_s1 + $0x10] sm:$0xff] (!%p355_p9)  ;;  %vm700_vm6 = vcmp.ge.s32.totalorder (!%p355_p9), %v1874_v36, 16  ;;  %vm701_vm7 = vcmp.lt.s32.totalorder (!%p355_p9), %v1874_v36, 32  ;;  %vm671_vm9 = vcmp.lt.s32.totalorder (!%p355_p9), %v1874_v36, 16  ;;  %s2003_s16 = scalar_lea.hbm (!%p355_p9), %s2149_s7, %s1997_s30 }
  0x1e   : > { %v1385_v4 = vpack.c.bf16 (!%p355_p9), %v422_v1, %v421_v0  ;;  %v424_v5 = vld [vmem:[%s2165_s1 + $0x18] sm:$0xff] (!%p355_p9)  ;;  %v573_v8 = vld [vmem:[%s2166_s3] sm:$0xff] (!%p355_p9)  ;;  %v574_v9 = vld [vmem:[%s2166_s3 + $0x8] sm:$0xff] (!%p355_p9)  ;;  %s1505_s1 = sshll.u32 (!%p355_p9), %s1660_s29, 4  ;;  %s1506_s1 = int_to_ptr.vmem [resolvable:$false] %s1505_s1 }
  0x1f   : > { %v1388_v7 = vpack.c.bf16 %v424_v5, %v423_v2  ;;  %s1794_s25 = scalar_select %p412_p10, %s1745_s21, 1  ;;  %v1397_v11 = vpack.c.bf16 %v574_v9, %v573_v8  ;;  %v575_v12 = vld [vmem:[%s2166_s3 + $0x10] sm:$0xff]  ;;  %v576_v13 = vld [vmem:[%s2166_s3 + $0x18] sm:$0xff]  ;;  %v577_v15 = vld [vmem:[%s2166_s3 + $0x20] sm:$0xff] }
  0x20   : > { %1386 = vmatpush3.bf16.msra.mxu0 %v1385_v4  ;;  %v1400_v14 = vpack.c.bf16 %v576_v13, %v575_v12  ;;  %v578_v16 = vld [vmem:[%s2166_s3 + $0x28] sm:$0xff]  ;;  %v579_v18 = vld [vmem:[%s2166_s3 + $0x30] sm:$0xff]  ;;  %v580_v19 = vld [vmem:[%s2166_s3 + $0x38] sm:$0xff] }
  0x21   : > { %1387 = vmatprep.subr.bf16.mxu0 %v1657_v3  ;;  %s2156_s14 = sshll.u32 %s1794_s25, 3  ;;  %v1403_v17 = vpack.c.bf16 %v578_v16, %v577_v15  ;;  %v1406_v20 = vpack.c.bf16 %v580_v19, %v579_v18  ;;  %v581_v21 = vld [vmem:[%s2166_s3 + $0x40] sm:$0xff]  ;;  %v582_v22 = vld [vmem:[%s2166_s3 + $0x48] sm:$0xff]  ;;  %v583_v24 = vld [vmem:[%s2166_s3 + $0x50] sm:$0xff]  ;;  %s2170_s12 = sshll.u32 %s1794_s25, 3 }
  0x22   : > { %s415_s24 = scalar_lea.vmem %s2167_s0, %s2156_s14  ;;  %v1409_v23 = vpack.c.bf16 %v582_v22, %v581_v21  ;;  %v584_v25 = vld [vmem:[%s2166_s3 + $0x58] sm:$0xff]  ;;  %v585_v27 = vld [vmem:[%s2166_s3 + $0x60] sm:$0xff]  ;;  %v586_v28 = vld [vmem:[%s2166_s3 + $0x68] sm:$0xff]  ;;  %s2157_s0 = scalar_lea.vmem [#allocation6], %s1869_s15 }
  0x23   : > { %v1809_v10 = vld [vmem:[%s415_s24] sm:$0xff]  ;;  %v1412_v26 = vpack.c.bf16 %v584_v25, %v583_v24  ;;  %v1415_v29 = vpack.c.bf16 %v586_v28, %v585_v27  ;;  %v587_v30 = vld [vmem:[%s2166_s3 + $0x70] sm:$0xff]  ;;  %v588_v31 = vld [vmem:[%s2166_s3 + $0x78] sm:$0xff]  ;;  %s419_s14 = scalar_lea.vmem %s2153_s11, %s2170_s12 }
  0x24   : > { %1389 = vmatpush3.bf16.msra.mxu0 %v1388_v7  ;;  %v1418_v32 = vpack.c.bf16 %v588_v31, %v587_v30  ;;  %vm734_vm8 = vmand %vm732_vm2, %vm733_vm3  ;;  %v499_v8 = vld [vmem:[%s2168_s2] sm:$0xff]  ;;  %v500_v9 = vld [vmem:[%s2168_s2 + $0x8] sm:$0xff] }
  0x25   : > { %1396 = vmatprep.subr.bf16.mxu0 %v1657_v3  ;;  %vm766_vm11 = vmand %vm764_vm4, %vm765_vm5  ;;  %v1391_v12 = vpack.c.bf16 %v500_v9, %v499_v8  ;;  %v502_v13 = vld [vmem:[%s2168_s2 + $0x18] sm:$0xff]  ;;  %v796_v30 = vld [vmem:[%s2169_s4] sm:$0xff] }
  0x26   : > { %vm702_vm12 = vmand %vm700_vm6, %vm701_vm7  ;;  %v797_v31 = vld [vmem:[%s2169_s4 + $0x8] sm:$0xff] }
  0x27   : > { %1298 = vmatmul.mubr.msk.f32.vlgmr.msra.gmra.mrb[0].mxu0 %vm425_vm1, %v1809_v10  ;;  %1392 = vmatpush3.bf16.msra.mxu1 %v1391_v12 }
  0x28   : > { %1398 = vmatpush3.bf16.msra.mxu0 %v1397_v11  ;;  %1343 = vmatprep.mubr.msk.f32.mxu0 %vm1658_vm0, %v1659_v6  ;;  %v501_v11 = vld [vmem:[%s2168_s2 + $0x10] sm:$0xff]  ;;  %s1507_s2 = scalar_lea.vmem %s1506_s1, 256 }
  0x29   : > { %1399 = vmatprep.subr.bf16.mxu0 %v1657_v3  ;;  %1393 = vmatprep.subr.bf16.mxu1 %v1657_v3 }
  0x2c   : > { %1401 = vmatpush3.bf16.msra.mxu0 %v1400_v14  ;;  %v1394_v14 = vpack.c.bf16 %v502_v13, %v501_v11  ;;  %v877_v13 = vld [vmem:[%s2147_s5] sm:$0xff] }
  0x2d   : > { %1402 = vmatprep.subr.bf16.mxu0 %v1657_v3 }
  0x2e   : > { %1395 = vmatpush3.bf16.msra.mxu1 %v1394_v14  ;;  %v878_v14 = vld [vmem:[%s2147_s5 + $0x8] sm:$0xff] }
  0x2f   : > { %1420 = vmatprep.subr.bf16.mxu1 %v1657_v3 }
  0x30   : > { %1404 = vmatpush3.bf16.msra.mxu0 %v1403_v17 }
  0x31   : > { %1405 = vmatprep.subr.bf16.mxu0 %v1657_v3  ;;  %1309 = vmatmul.mubr.msk.f32.vlgmr.msra.gmra.mrb[0].mxu1 %vm425_vm1, %v1809_v10 }
  0x32   : > { %1362 = vmatprep.mubr.msk.f32.mxu1 %vm1658_vm0, %v1659_v6 }
  0x34   : > { %1407 = vmatpush3.bf16.msra.mxu0 %v1406_v20 }
  0x35   : > { %1408 = vmatprep.subr.bf16.mxu0 %v1657_v3 }
  0x38   : > { %1410 = vmatpush3.bf16.msra.mxu0 %v1409_v23 }
  0x39   : > { %1411 = vmatprep.subr.bf16.mxu0 %v1657_v3 }
  0x3c   : > { %1413 = vmatpush3.bf16.msra.mxu0 %v1412_v26 }
  0x3d   : > { %1414 = vmatprep.subr.bf16.mxu0 %v1657_v3 }
  0x40   : > { %1416 = vmatpush3.bf16.msra.mxu0 %v1415_v29 }
  0x41   : > { %1417 = vmatprep.subr.bf16.mxu0 %v1657_v3 }
  0x44   : > { %1419 = vmatpush3.bf16.msra.mxu0 %v1418_v32  ;;  %v1421_v32 = vpack.c.bf16 %v797_v31, %v796_v30 }
  0x46   : > { %1422 = vmatpush3.bf16.msra.mxu1 %v1421_v32 }
  0x47   : > { %1423 = vmatprep.subr.bf16.mxu1 %v1657_v3 }
  0xfa   : > { %v495_v33 = vpop.f32.mrb[0].mxu0 }
  0xfb   : > { %955 = vst [vmem:[%s2155_s22] sm:$0xff] %v495_v33  ;;  %v1299_v34 = vpop.f32.mrb[1].mxu0  ;;  %1344 = vmatmul.mubr.f32.vlgmr.msra.gmra.mrb[2].mxu0 %v495_v33  ;;  %v798_v33 = vld [vmem:[%s2169_s4 + $0x10] sm:$0xff] }
  0xfc   : > { %v799_v34 = vld [vmem:[%s2169_s4 + $0x18] sm:$0xff] }
  0xfd   : > { %v1424_v35 = vpack.c.bf16 %v799_v34, %v798_v33 }
  0xff   : > { %1425 = vmatpush3.bf16.msra.mxu1 %v1424_v35 }
 0x100   : > { %1426 = vmatprep.subr.bf16.mxu1 %v1657_v3 }
 0x1ce   : > { %v655_v37 = vpop.f32.mrb[2].mxu0 }
 0x1cf   : > { %v659_v39 = vmul.f32 2.0, %v655_v37  ;;  %v1345_v40 = vpop.f32.mrb[3].mxu0  ;;  %v800_v37 = vld [vmem:[%s2169_s4 + $0x20] sm:$0xff] }
 0x1d0   : > { %v802_v40 = vld [vmem:[%s2169_s4 + $0x30] sm:$0xff] }
 0x1d1   : > { %v667_v41 = vsub.f32 %v659_v39, %v1224_v38  ;;  %v801_v38 = vld [vmem:[%s2169_s4 + $0x28] sm:$0xff] }
 0x1d2   : > { %v1427_v39 = vpack.c.bf16 %v801_v38, %v800_v37 }
 0x1d3   : > { %v735_v42 = vsel %vm734_vm8, %v667_v41, -3e+38  ;;  %v673_v43 = vsel %vm671_vm9, %v667_v41, -3e+38  ;;  %v767_v46 = vsel %vm766_vm11, %v667_v41, -3e+38 }
 0x1d4   : > { %v736_v44 = vsel %vm674_vm10, %v735_v42, -inf  ;;  %v675_v45 = vsel %vm674_vm10, %v673_v43, -inf  ;;  %v703_v47 = vsel %vm702_vm12, %v667_v41, -3e+38  ;;  %v768_v48 = vsel %vm674_vm10, %v767_v46, -inf  ;;  %1428 = vmatpush3.bf16.msra.mxu1 %v1427_v39  ;;  %v803_v41 = vld [vmem:[%s2169_s4 + $0x38] sm:$0xff] }
 0x1d5   : > { %737 = vmax.xlane.f32.xlu1 %v736_v44  ;;  %676 = vmax.xlane.f32.xlu0 %v675_v45  ;;  %v704_v49 = vsel %vm674_vm10, %v703_v47, -inf  ;;  %vm698_vm8 = vcmp.eq.s32.totalorder %v1874_v36, 0  ;;  %vm727_vm9 = vcmp.eq.s32.totalorder %v1874_v36, 1 }
 0x1d6   : > { %1429 = vmatprep.subr.bf16.mxu1 %v1657_v3 }
 0x1d9   : > { %769 = vmax.xlane.f32.xlu1 %v768_v48  ;;  %705 = vmax.xlane.f32.xlu0 %v704_v49 }
 0x262   : > { %v738_v50 = vpop.xlane.xlu1 %737  ;;  %v677_v51 = vpop.xlane.xlu0 %676 }
 0x263   : > { %vm739_vm13 = vcmp.eq.f32.partialorder %v735_v42, %v738_v50  ;;  %vm678_vm14 = vcmp.eq.f32.partialorder %v673_v43, %v677_v51  ;;  %v1430_v42 = vpack.c.bf16 %v803_v41, %v802_v40  ;;  %v569_v43 = vpop.f32.mrb[0].mxu1 }
 0x264   : > { %v740_v52 = vsel %vm739_vm13, %v1874_v36, 64  ;;  %v679_v53 = vsel %vm678_vm14, %v1874_v36, 64  ;;  %957 = vst.msk [vmem:[%s2157_s0] sm:$0xff] %vm425_vm1, %v569_v43  ;;  %v1310_v44 = vpop.f32.mrb[1].mxu1  ;;  %vm759_vm13 = vcmp.eq.s32.totalorder %v1874_v36, 2  ;;  %vm791_vm14 = vcmp.eq.s32.totalorder %v1874_v36, 3 }
 0x265   : > { %v741_v54 = vsel %vm674_vm10, %v740_v52, 2147483647  ;;  %v680_v55 = vsel %vm674_vm10, %v679_v53, 2147483647  ;;  %1431 = vmatpush3.bf16.msra.mxu1 %v1430_v42  ;;  %s2171_s0 = scalar_lea.vmem [#allocation2], %s1869_s15 }
 0x266   : > { %v770_v56 = vpop.xlane.xlu1 %769  ;;  %v706_v57 = vpop.xlane.xlu0 %705  ;;  %v682_v58 = vshra.s32 %v680_v55, 16  ;;  %v743_v62 = vshra.s32 %v741_v54, 16  ;;  %v681_v15 = vand.u32 65535, %v680_v55  ;;  %v742_v19 = vand.u32 65535, %v741_v54  ;;  %1432 = vmatprep.subr.bf16.mxu1 %v1657_v3  ;;  %s994_s24 = sshll.u32 %s2171_s0, 4  ;;  %s995_s24 = int_to_ptr.vmem [resolvable:$true] %s994_s24 }
 0x267   : > { %vm771_vm15 = vcmp.eq.f32.partialorder %v767_v46, %v770_v56  ;;  %vm707_vm2 = vcmp.eq.f32.partialorder %v703_v47, %v706_v57  ;;  %s1501_s22 = scalar_lea.vmem %s995_s24, 128  ;;  %p1508_p0 = scmp.lt.s32.totalorder %s995_s24, %s1506_s1 }
 0x268   : > { %v772_v59 = vsel %vm771_vm15, %v1874_v36, 64  ;;  %v708_v60 = vsel %vm707_vm2, %v1874_v36, 64  ;;  %v684_v61 = vcvt.s32.f32 %v682_v58  ;;  %v745_v2 = vcvt.s32.f32 %v743_v62  ;;  %p1502_p11 = scmp.ne.s32.totalorder %s995_s24, %s1501_s22  ;;  %p1509_p1 = scmp.lt.s32.totalorder %s1507_s2, %s1501_s22 }
 0x269   : > { %v773_v63 = vsel %vm674_vm10, %v772_v59, 2147483647  ;;  %v709_v0 = vsel %vm674_vm10, %v708_v60, 2147483647  ;;  %v683_v17 = vcvt.s32.f32 %v681_v15  ;;  %v744_v24 = vcvt.s32.f32 %v742_v19 }
 0x26a   : > { %685 = vmin.xlane.f32.xlu0 %v684_v61  ;;  %v711_v1 = vshra.s32 %v709_v0, 16  ;;  %v775_v5 = vshra.s32 %v773_v63, 16  ;;  %v710_v18 = vand.u32 65535, %v709_v0  ;;  %v774_v25 = vand.u32 65535, %v773_v63  ;;  %p1503_p12 = pnand %p1502_p11, %p1764_p5  ;;  %p1510_p2 = por %p1509_p1, %p1508_p0 }
 0x26b   : > { %vm959_vm2 = vcmask 31744  }
 0x26c   : > { %v713_v4 = vcvt.s32.f32 %v711_v1  ;;  %v777_v7 = vcvt.s32.f32 %v775_v5  ;;  %v712_v23 = vcvt.s32.f32 %v710_v18  ;;  %v776_v28 = vcvt.s32.f32 %v774_v25  ;;  %p1504_p13 = pneg %p1503_p12 }
 0x26e   : > { %746 = vmin.xlane.f32.xlu0 %v745_v2  ;;  %714 = vmin.xlane.f32.xlu1 %v713_v4  ;;  %p1511_p3 = pnand %p1510_p2, %p1504_p13 }
 0x272   : > { %778 = vmin.xlane.f32.xlu1 %v777_v7 }
 0x2f7   : > { %v686_v16 = vpop.xlane.xlu0 %685 }
 0x2f8   : > { %vm687_vm3 = vcmp.eq.f32.partialorder %v684_v61, %v686_v16  ;;  %v692_v45 = vcvt.f32.s32 %v686_v16 }
 0x2f9   : > { %v688_v20 = vsel %vm687_vm3, %v683_v17, inf }
 0x2fa   : > { %689 = vmin.xlane.f32.xlu0 %v688_v20  ;;  %v693_v47 = vshll.u32 %v692_v45, 16  ;;  %v1433_v20 = vpack.c.bf16 %v878_v14, %v877_v13 }
 0x2fb   : > { %v715_v21 = vpop.xlane.xlu1 %714  ;;  %v747_v22 = vpop.xlane.xlu0 %746 }
 0x2fc   : > { %vm716_vm4 = vcmp.eq.f32.partialorder %v713_v4, %v715_v21  ;;  %vm748_vm5 = vcmp.eq.f32.partialorder %v745_v2, %v747_v22  ;;  %v721_v48 = vcvt.f32.s32 %v715_v21  ;;  %v753_v49 = vcvt.f32.s32 %v747_v22 }
 0x2fd   : > { %v717_v26 = vsel %vm716_vm4, %v712_v23, inf  ;;  %v749_v10 = vsel %vm748_vm5, %v744_v24, inf  ;;  %v879_v23 = vld [vmem:[%s2147_s5 + $0x10] sm:$0xff] }
 0x2fe   : > { %718 = vmin.xlane.f32.xlu1 %v717_v26  ;;  %750 = vmin.xlane.f32.xlu0 %v749_v10  ;;  %v722_v55 = vshll.u32 %v721_v48, 16  ;;  %v754_v56 = vshll.u32 %v753_v49, 16  ;;  %v881_v26 = vld [vmem:[%s2147_s5 + $0x20] sm:$0xff]  ;;  %v882_v10 = vld [vmem:[%s2147_s5 + $0x28] sm:$0xff] }
 0x2ff   : > { %v779_v27 = vpop.xlane.xlu1 %778 }
 0x300   : > { %vm780_vm6 = vcmp.eq.f32.partialorder %v777_v7, %v779_v27  ;;  %v785_v52 = vcvt.f32.s32 %v779_v27  ;;  %v1439_v27 = vpack.c.bf16 %v882_v10, %v881_v26 }
 0x301   : > { %v781_v29 = vsel %vm780_vm6, %v776_v28, inf  ;;  %v884_v28 = vld [vmem:[%s2147_s5 + $0x38] sm:$0xff] }
 0x302   : > { %782 = vmin.xlane.f32.xlu1 %v781_v29  ;;  %v786_v61 = vshll.u32 %v785_v52, 16 }
 0x387   : > { %v690_v46 = vpop.xlane.xlu0 %689 }
 0x388   : > { %v691_v50 = vcvt.f32.s32 %v690_v46 }
 0x38a   : > { %v694_v51 = vadd.s32 %v693_v47, %v691_v50 }
 0x38b   : > { %v719_v53 = vpop.xlane.xlu1 %718  ;;  %v751_v54 = vpop.xlane.xlu0 %750 }
 0x38c   : > { %v720_v57 = vcvt.f32.s32 %v719_v53  ;;  %v752_v58 = vcvt.f32.s32 %v751_v54  ;;  %vm695_vm7 = vcmp.eq.s32.totalorder %v1874_v36, %v694_v51  ;;  %v699_v5 = vsel %vm698_vm8, %v694_v51, 0 }
 0x38d   : > { %v1225_v1 = vsel %vm695_vm7, 1.0, %v1659_v6 }
 0x38e   : > { %v723_v59 = vadd.s32 %v722_v55, %v720_v57  ;;  %v755_v60 = vadd.s32 %v754_v56, %v752_v58 }
 0x38f   : > { %v783_v62 = vpop.xlane.xlu1 %782 }
 0x390   : > { %vm724_vm11 = vcmp.eq.s32.totalorder %v1874_v36, %v723_v59  ;;  %v1227_v63 = vadd.s32 4294967280, %v723_v59  ;;  %vm756_vm12 = vcmp.eq.s32.totalorder %v1874_v36, %v755_v60  ;;  %v1229_v0 = vadd.s32 4294967264, %v755_v60 }
 0x391   : > { %v1226_v2 = vsel %vm724_vm11, 1.0, %v1659_v6  ;;  %v784_v4 = vcvt.f32.s32 %v783_v62  ;;  %v1228_v11 = vsel %vm756_vm12, 1.0, %v1659_v6 }
 0x392   : > { %v729_v7 = vsel %vm727_vm9, %v1227_v63, 0  ;;  %v730_v8 = vadd.f32 %v1226_v2, %v1225_v1  ;;  %v761_v15 = vsel %vm759_vm13, %v1229_v0, 0 }
 0x393   : > { %v731_v9 = vadd.s32 %v729_v7, %v699_v5  ;;  %v787_v12 = vadd.s32 %v786_v61, %v784_v4 }
 0x394   : > { %v762_v16 = vadd.f32 %v1228_v11, %v730_v8 }
 0x395   : > { %v763_v17 = vadd.s32 %v761_v15, %v731_v9  ;;  %vm788_vm15 = vcmp.eq.s32.totalorder %v1874_v36, %v787_v12  ;;  %v1231_v18 = vadd.s32 4294967248, %v787_v12  ;;  %v880_v36 = vld [vmem:[%s2147_s5 + $0x18] sm:$0xff] }
 0x396   : > { %v1230_v19 = vsel %vm788_vm15, 1.0, %v1659_v6  ;;  %v1436_v25 = vpack.c.bf16 %v880_v36, %v879_v23 }
 0x397   : > { %v793_v21 = vsel %vm791_vm14, %v1231_v18, 0  ;;  %v794_v22 = vadd.f32 %v1230_v19, %v762_v16 }
 0x398   : > { %v795_v24 = vadd.s32 %v793_v21, %v763_v17 }
 0x399   : > { %1363 = vmatmul.mubr.msk.f32.vlgmr.msra.gmra.mrb[2].mxu1 %vm674_vm10, %v794_v22 }
 0x39a   : > { %960 = vst.msk [vmem:[%s419_s14] sm:$0xff] %vm959_vm2, %v795_v24  ;;  %1434 = vmatpush3.bf16.msra.mxu1 %v1433_v20  ;;  %1381 = vmatprep.mubr.msk.f32.mxu1 %vm1658_vm0, %v1659_v6  ;;  %v883_v6 = vld [vmem:[%s2147_s5 + $0x30] sm:$0xff]  ;;  %s962_s14 = scalar_lea.sflag [#allocation3], %s1866_s13 }
 0x39b   : > { %1435 = vmatprep.subr.bf16.mxu1 %v1657_v3  ;;  %v1442_v29 = vpack.c.bf16 %v884_v28, %v883_v6 }
 0x39e   : > { %1437 = vmatpush3.bf16.msra.mxu1 %v1436_v25 }
 0x39f   : > { %1438 = vmatprep.subr.bf16.mxu1 %v1657_v3 }
 0x3a2   : > { %1440 = vmatpush3.bf16.msra.mxu1 %v1439_v27 }
 0x3a3   : > { %1441 = vmatprep.subr.bf16.mxu1 %v1657_v3 }
 0x3a6   : > { %1443 = vmatpush3.bf16.msra.mxu1 %v1442_v29 }
 0x3a9   : > { %1382 = vmatmul.mubr.msk.f32.vlgmr.msra.gmra.mrb[4].mxu1 %vm674_vm10, %v794_v22 }
 0x3aa   : > { %1514 = shalt.err (!%p1511_p3)
}
 0x3ab   : > { %s1515_s25 = scalar_lea.hbm %s2003_s16, 128  ;;  %s1519_s29 = scalar_lea.hbm %s2149_s7, 256 }
 0x3ac   : > { %p1516_p4 = scmp.ne.s32.totalorder %s2003_s16, %s1515_s25  ;;  %p1520_p9 = scmp.lt.u32.totalorder %s2003_s16, %s2149_s7 }
 0x3ad   : > { %p1521_p10 = scmp.lt.u32.totalorder %s1519_s29, %s1515_s25  ;;  %p1523_p12 = scmp.lt.u32.totalorder %s1515_s25, %s2003_s16 }
 0x3ae   : > { %p1517_p7 = pnand %p1516_p4, %p1764_p5 }
 0x3af   : > { %p1522_p11 = por %p1521_p10, %p1520_p9 }
 0x3b0   : > { %p1518_p8 = pneg %p1517_p7 }
 0x3b1   : > { %p1524_p13 = por %p1523_p12, %p1522_p11 }
 0x3b3   : > { %p1525_p0 = pnand %p1524_p13, %p1518_p8 }
 0x3b5   : > { %1528 = shalt.err (!%p1525_p0)
}
 0x3b6   : > { %1444 = dma.vmem_to_hbm [thread:$0]  (%p1764_p5), %s995_s24, 128, %s2003_s16, %s962_s14  }
 0x3b7   : > { %s391_s2 = scalar_lea.vmem [#allocation4], %s1869_s15  ;;  %s966_s3 = sand.u32 1, %s1745_s21  }
 0x3b8   : > { %s1007_s22 = sshll.u32 %s391_s2, 4  ;;  %s2172_s12 = scalar_lea.vmem [#allocation6], %s1869_s15  ;;  %s2029_s22 = int_to_ptr.vmem [resolvable:$true] %s1007_s22 }
 0x3b9   : > { %s1020_s0 = sshll.u32 %s2172_s12, 4  ;;  %s2035_s1 = scalar_lea.hbm %s2150_s8, %s1997_s30  ;;  %s2037_s0 = int_to_ptr.vmem [resolvable:$true] %s1020_s0 }
 0x3ba   : > { %s2043_s24 = scalar_lea.hbm %s2151_s9, %s1997_s30  ;;  %s2045_s21 = scalar_lea.sflag [#allocation5], %s966_s3 }
 0x3bb   : > { %s1529_s14 = scalar_lea.vmem %s2029_s22, 128  ;;  %s1661_s12 = smov [#allocation4]  }
 0x3bc   : > { %p1530_p1 = scmp.ne.s32.totalorder %s2029_s22, %s1529_s14  ;;  %s1533_s25 = sshll.u32 %s1661_s12, 4  ;;  %s1534_s25 = int_to_ptr.vmem [resolvable:$false] %s1533_s25 }
 0x3bd   : > { %s1535_s29 = scalar_lea.vmem %s1534_s25, 256  ;;  %p1536_p4 = scmp.lt.s32.totalorder %s2029_s22, %s1534_s25 }
 0x3be   : > { %p1531_p2 = pnand %p1530_p1, %p1764_p5  ;;  %p1537_p7 = scmp.lt.s32.totalorder %s1535_s29, %s1529_s14 }
 0x3c0   : > { %p1532_p3 = pneg %p1531_p2  ;;  %p1538_p8 = por %p1537_p7, %p1536_p4 }
 0x3c2   : > { %p1539_p9 = pnand %p1538_p8, %p1532_p3 }
 0x46c   : > { %v873_v3 = vpop.f32.mrb[2].mxu1 }
 0x46d   : > { %956 = vst [vmem:[%s391_s2] sm:$0xff] %v873_v3  ;;  %v1364_v30 = vpop.f32.mrb[3].mxu1 }
 0x46e   : > { %1542 = shalt.err (!%p1539_p9)
}
 0x46f   : > { %s1543_s4 = scalar_lea.hbm %s2035_s1, 128  ;;  %s1547_s16 = scalar_lea.hbm %s2150_s8, 256 }
 0x470   : > { %p1544_p10 = scmp.ne.s32.totalorder %s2035_s1, %s1543_s4  ;;  %p1548_p13 = scmp.lt.u32.totalorder %s2035_s1, %s2150_s8 }
 0x471   : > { %p1549_p0 = scmp.lt.u32.totalorder %s1547_s16, %s1543_s4  ;;  %p1551_p2 = scmp.lt.u32.totalorder %s1543_s4, %s2035_s1 }
 0x472   : > { %p1545_p11 = pnand %p1544_p10, %p1764_p5 }
 0x473   : > { %p1550_p1 = por %p1549_p0, %p1548_p13 }
 0x474   : > { %p1546_p12 = pneg %p1545_p11 }
 0x475   : > { %p1552_p3 = por %p1551_p2, %p1550_p1 }
 0x477   : > { %p1553_p4 = pnand %p1552_p3, %p1546_p12 }
 0x479   : > { %1556 = shalt.err (!%p1553_p4)
}
 0x47a   : > { %1445 = dma.vmem_to_hbm [thread:$0]  (%p1764_p5), %s2029_s22, 128, %s2035_s1, %s2045_s21  }
 0x47b   : > { %s1557_s14 = scalar_lea.vmem %s2037_s0, 128  ;;  %s1662_s29 = smov [#allocation6]  }
 0x47c   : > { %p1558_p7 = scmp.ne.s32.totalorder %s2037_s0, %s1557_s14  ;;  %s1561_s4 = sshll.u32 %s1662_s29, 4  ;;  %s1562_s4 = int_to_ptr.vmem [resolvable:$false] %s1561_s4 }
 0x47d   : > { %s1563_s2 = scalar_lea.vmem %s1562_s4, 256  ;;  %p1564_p10 = scmp.lt.s32.totalorder %s2037_s0, %s1562_s4 }
 0x47e   : > { %p1559_p8 = pnand %p1558_p7, %p1764_p5  ;;  %p1565_p11 = scmp.lt.s32.totalorder %s1563_s2, %s1557_s14 }
 0x480   : > { %p1560_p9 = pneg %p1559_p8  ;;  %p1566_p12 = por %p1565_p11, %p1564_p10 }
 0x482   : > { %p1567_p13 = pnand %p1566_p12, %p1560_p9 }
 0x484   : > { %1570 = shalt.err (!%p1567_p13)
}
 0x485   : > { %s1571_s22 = scalar_lea.hbm %s2043_s24, 128  ;;  %s1575_s16 = scalar_lea.hbm %s2151_s9, 256 }
 0x486   : > { %p1572_p0 = scmp.ne.s32.totalorder %s2043_s24, %s1571_s22  ;;  %p1576_p3 = scmp.lt.u32.totalorder %s2043_s24, %s2151_s9 }
 0x487   : > { %p1577_p4 = scmp.lt.u32.totalorder %s1575_s16, %s1571_s22  ;;  %p1579_p8 = scmp.lt.u32.totalorder %s1571_s22, %s2043_s24 }
 0x488   : > { %p1573_p1 = pnand %p1572_p0, %p1764_p5 }
 0x489   : > { %p1578_p7 = por %p1577_p4, %p1576_p3 }
 0x48a   : > { %p1574_p2 = pneg %p1573_p1 }
 0x48b   : > { %p1580_p9 = por %p1579_p8, %p1578_p7 }
 0x48d   : > { %p1581_p10 = pnand %p1580_p9, %p1574_p2 }
 0x48f   : > { %1584 = shalt.err (!%p1581_p10)
}
 0x490   : > { %1446 = dma.vmem_to_hbm [thread:$0]  (%p1764_p5), %s2037_s0, 128, %s2043_s24, %s2045_s21   ;;  %v951_v31 = vpop.f32.mrb[4].mxu1 }
 0x491   : > { %s405_s14 = scalar_lea.vmem [#allocation7], %s1869_s15  ;;  %s2096_s1 = scalar_lea.hbm %s2152_s10, %s1997_s30  ;;  %v1383_v32 = vpop.f32.mrb[5].mxu1 }
 0x492   : > { %s1033_s29 = sshll.u32 %s405_s14, 4  ;;  %958 = vst.msk [vmem:[%s405_s14] sm:$0xff] %vm425_vm1, %v951_v31  ;;  %s977_s22 = scalar_lea.sflag [#allocation8], %s1866_s13  ;;  %s2098_s29 = int_to_ptr.vmem [resolvable:$true] %s1033_s29 }
 0x493   : > { %s1585_s3 = scalar_lea.vmem %s2098_s29, 128  ;;  %s1663_s15 = smov [#allocation7]  }
 0x494   : > { %p1586_p11 = scmp.ne.s32.totalorder %s2098_s29, %s1585_s3  ;;  %s1589_s0 = sshll.u32 %s1663_s15, 4  ;;  %s1590_s0 = int_to_ptr.vmem [resolvable:$false] %s1589_s0 }
 0x495   : > { %s1591_s30 = scalar_lea.vmem %s1590_s0, 256  ;;  %p1592_p0 = scmp.lt.s32.totalorder %s2098_s29, %s1590_s0 }
 0x496   : > { %p1587_p12 = pnand %p1586_p11, %p1764_p5  ;;  %p1593_p1 = scmp.lt.s32.totalorder %s1591_s30, %s1585_s3 }
 0x498   : > { %p1588_p13 = pneg %p1587_p12  ;;  %p1594_p2 = por %p1593_p1, %p1592_p0 }
 0x49a   : > { %p1595_p3 = pnand %p1594_p2, %p1588_p13 }
 0x49c   : > { %1598 = shalt.err (!%p1595_p3)
}
 0x49d   : > { %s1599_s13 = scalar_lea.hbm %s2096_s1, 128  ;;  %s1603_s16 = scalar_lea.hbm %s2152_s10, 256 }
 0x49e   : > { %p1600_p4 = scmp.ne.s32.totalorder %s2096_s1, %s1599_s13  ;;  %p1604_p9 = scmp.lt.u32.totalorder %s2096_s1, %s2152_s10 }
 0x49f   : > { %p1605_p10 = scmp.lt.u32.totalorder %s1603_s16, %s1599_s13  ;;  %p1607_p12 = scmp.lt.u32.totalorder %s1599_s13, %s2096_s1 }
 0x4a0   : > { %p1601_p7 = pnand %p1600_p4, %p1764_p5 }
 0x4a1   : > { %p1606_p11 = por %p1605_p10, %p1604_p9 }
 0x4a2   : > { %p1602_p8 = pneg %p1601_p7 }
 0x4a3   : > { %p1608_p13 = por %p1607_p12, %p1606_p11 }
 0x4a5   : > { %p1609_p0 = pnand %p1608_p13, %p1602_p8 }
 0x4a7   : > { %1612 = shalt.err (!%p1609_p0)
}
 0x4a8   : > { %1447 = dma.vmem_to_hbm [thread:$0]  (%p1764_p5), %s2098_s29, 128, %s2096_s1, %s977_s22  }
 0x4a9 PF: > { %p1465_p1 = scmp.ge.s32.totalorder %s1655_s20, 2  ;;  %s1048_s14 = sand.u32 1, %s1643_s17  }
 0x4aa   : > { %s1049_s4 = scalar_lea.sflag [#allocation3], %s1048_s14 }
 0x4ab   : > { %p1453_p2 = pnand %p1465_p1, %p1768_p6 }
 0x4ad   : > { %1630 = dma.done.wait (!%p1453_p2), %s1049_s4, 128  }
 0x4ae   : > { %1632 = vsyncadd (!%p1453_p2), %s1049_s4, 4294967168  ;;  %s2173_s2 = sadd.s32 4294967294, %s1655_s20  }
 0x4af   : > { %s1057_s3 = sand.u32 1, %s2173_s2  }
 0x4b0   : > { %s1058_s15 = scalar_lea.sflag [#allocation5], %s1057_s3 }
 0x4b1   : > { %1634 = dma.done.wait (!%p1453_p2), %s1058_s15, 256  }
 0x4b2   : > { %1636 = vsyncadd (!%p1453_p2), %s1058_s15, 4294967040  ;;  %s1076_s27 = scalar_lea.sflag [#allocation8], %s1048_s14 }
 0x4b3   : > { %1638 = dma.done.wait (!%p1453_p2), %s1076_s27, 128  }
 0x4b4   : > { %1640 = vsyncadd (!%p1453_p2), %s1076_s27, 4294967168  ;;  %p28_p5 = scmp.ge.s32.totalorder %s1749_s23, 4   ;;  %s2174_s17 = smov %s1647_s18 }
 0x4b5   : > { %s2175_s18 = smov %s1651_s19  ;;  %s2176_s19 = smov %s1762_s26 }
 0x4b6   : > { %s2177_s20 = smov %s1749_s23  ;;  %30 = sbr.rel (!%p28_p5) target bundleno = 13 (0xd), region = 144 }
 0x4bd   :  { %1088 = vsyncpa [#allocation3], 1 }
 0x4be   :  { %1090 = vsyncpa [#allocation3 + $0x1], 1 }
 0x4bf   :  { %1091 = vsyncpa [#allocation5], 1 }
 0x4c0   :  { %1093 = vsyncpa [#allocation5 + $0x1], 1 }
 0x4c1   :  { %1094 = vsyncpa [#allocation8], 1 }
 0x4c2   :  { %1096 = vsyncpa [#allocation8 + $0x1], 1 }

</bundles_post_ra>
